<compile_context>
chip_gen: v7x
topology: tpu7x:2x2x1
jax: 0.10.0
libtpu: 0.0.40
codegen_flags: <defaults>
</compile_context>

<pallas_src>
import functools

import jax
import jax.numpy as jnp
import numpy as np
from jax.experimental import pallas as pl
from jax.experimental.pallas import tpu as pltpu


def _maxpool3d_kernel(x_ref, o_ref, *, k, s, dims):
    k0, k1, k2 = k
    s0, s1, s2 = s
    W1, H2, C2 = dims

    # ---- composite H reduction: folds stage-1 (k1,s1) and stage-2 (k0,k0)
    # H pools into one strided pool read directly from the input block ref.
    #   out row h2 uses input rows h = h2*(k0*s1) + d,  d in {p*s1 + i}.
    stride_h = k0 * s1
    offsets_h = sorted({p * s1 + i for p in range(k0) for i in range(k1)})
    vh = None
    for d in offsets_h:
        win = pl.ds(d, H2) if stride_h == 1 else pl.ds(d, H2, stride_h)
        sl = x_ref[:, :, win, :]                       # (Nb, C, H2, W)
        vh = sl if vh is None else jnp.maximum(vh, sl)

    # ---- W pooling (kernel k2, stride s2), in registers on the lane axis.
    vw = None
    for j in range(k2):
        if s2 == 1:
            sl = vh[:, :, :, j:j + W1]
        else:
            # TODO(synk): strided lane slice (s2 > 1) is untested on Mosaic;
            # only hit by LPRNet configs with a W-stride > 1.
            sl = vh[:, :, :, j:j + (W1 - 1) * s2 + 1:s2]
        vw = sl if vw is None else jnp.maximum(vw, sl)  # (Nb, C, H2, W1)

    # ---- C pooling (kernel k0, stride s0); C is a leading (untiled) dim.
    out = None
    for q in range(k0):
        if s0 == 1:
            sl = vw[:, q:q + C2]
        else:
            sl = vw[:, q:q + (C2 - 1) * s0 + 1:s0]
        out = sl if out is None else jnp.maximum(out, sl)  # (Nb, C2, H2, W1)

    o_ref[...] = out


def _pick_batch_block(N, per_n_bytes, target_bytes=1 << 20):
    """Batch elements per grid step: big blocks, but keep grid >= 2 (v7x)."""
    nb = max(1, min(N, target_bytes // max(per_n_bytes, 1)))
    if N >= 2:
        nb = min(nb, (N + 1) // 2)   # ensure at least 2 grid steps
    while N % nb:                    # even blocks only (no ragged last block)
        nb -= 1
    return int(nb)


def maxpool_3d(x, kernel_size, stride):
    assert len(kernel_size) == 3 and len(stride) == 3
    N, C, H, W = x.shape
    k0, k1, k2 = kernel_size
    s0, s1, s2 = stride
    # PyTorch MaxPool2d "valid" / floor-mode output sizes.
    H1 = (H - k1) // s1 + 1
    W1 = (W - k2) // s2 + 1
    H2 = (H1 - k0) // k0 + 1
    C2 = (C - k0) // s0 + 1

    itemsize = jnp.dtype(x.dtype).itemsize
    nb = _pick_batch_block(N, C * H * W * itemsize)
    grid = (N // nb,)

    in_block_bytes = nb * C * H * W * itemsize
    out_block_bytes = nb * C2 * H2 * W1 * itemsize
    # double-buffered in/out blocks + headroom; capped so it fits v7x VMEM.
    vmem_limit = int(min(max(2 * (in_block_bytes + out_block_bytes) + (2 << 20),
                             16 << 20),
                         64 << 20))

    cost = pl.CostEstimate(
        flops=int(N * C * H1 * W1 * (k1 * k2 - 1)
                  + N * C2 * H2 * W1 * (k0 * k0 - 1)),
        transcendentals=0,
        bytes_accessed=int((N * C * H * W + N * C2 * H2 * W1) * itemsize))

    kernel = functools.partial(
        _maxpool3d_kernel,
        k=(k0, k1, k2), s=(s0, s1, s2), dims=(W1, H2, C2))

    return pl.pallas_call(
        kernel,
        out_shape=jax.ShapeDtypeStruct((N, C2, H2, W1), x.dtype),
        grid=grid,
        in_specs=[pl.BlockSpec((nb, C, H, W), lambda n: (n, 0, 0, 0))],
        out_specs=pl.BlockSpec((nb, C2, H2, W1), lambda n: (n, 0, 0, 0)),
        compiler_params=pltpu.CompilerParams(
            dimension_semantics=("parallel",),
            vmem_limit_bytes=vmem_limit),
        cost_estimate=cost,
    )(x)


def maxpool_3d_ref(x, kernel_size, stride):
    """Pure-JAX reference mirroring the PyTorch module line-for-line."""
    k0, k1, k2 = kernel_size
    s0, s1, s2 = stride
    y = jax.lax.reduce_window(x, -jnp.inf, jax.lax.max,
                              (1, 1, k1, k2), (1, 1, s1, s2), "VALID")
    y = jnp.swapaxes(y, 1, 3)
    y = jax.lax.reduce_window(y, -jnp.inf, jax.lax.max,
                              (1, 1, k0, k0), (1, 1, k0, s0), "VALID")
    y = jnp.swapaxes(y, 1, 3)
    return y


if __name__ == "__main__":
    # Module has no learnable parameters; only pooling hyper-parameters.
    kernel_size = (2, 3, 3)
    stride = (1, 1, 1)

    key = jax.random.PRNGKey(0)
    x = jax.random.normal(key, (2, 4, 16, 16), dtype=jnp.float32)  # NCHW

    out = maxpool_3d(x, kernel_size, stride)
    out = jax.block_until_ready(out)

    ref = maxpool_3d_ref(x, kernel_size, stride)
    assert out.shape == ref.shape, (out.shape, ref.shape)
    np.testing.assert_allclose(np.asarray(out), np.asarray(ref),
                               rtol=1e-6, atol=1e-6)
    print("KERNEL_OK")
</pallas_src>

<mosaic_0001>
module attributes {stable_mosaic.version = 11 : i64} {
  func.func @_maxpool3d_kernel(%arg0: i32, %arg1: memref<1x4x16x16xf32, #tpu.memory_space<vmem>>, %arg2: memref<1x3x7x14xf32, #tpu.memory_space<vmem>>) attributes {dimension_semantics = [#tpu.dimension_semantics<parallel>], iteration_bounds = array<i64: 2>, scalar_prefetch = 0 : i64, scratch_operands = 0 : i64, tpu.core_type = #tpu.core_type<tc>, window_params = [{transform_indices = @transform_0, window_bounds = array<i64: 1, 4, 16, 16>}, {transform_indices = @transform_1, window_bounds = array<i64: 1, 3, 7, 14>}]} {
    %c0 = arith.constant 0 : index
    %c0_0 = arith.constant 0 : index
    %c0_1 = arith.constant 0 : index
    %c0_2 = arith.constant 0 : index
    %0 = tpu.strided_load %arg1[%c0, %c0_0, %c0_1, %c0_2] {strides = array<i32: 1, 1, 2, 1>} : memref<1x4x16x16xf32, #tpu.memory_space<vmem>>, vector<1x4x7x16xf32>
    %c0_3 = arith.constant 0 : index
    %c0_4 = arith.constant 0 : index
    %c1 = arith.constant 1 : index
    %c0_5 = arith.constant 0 : index
    %1 = tpu.strided_load %arg1[%c0_3, %c0_4, %c1, %c0_5] {strides = array<i32: 1, 1, 2, 1>} : memref<1x4x16x16xf32, #tpu.memory_space<vmem>>, vector<1x4x7x16xf32>
    %2 = arith.maximumf %0, %1 : vector<1x4x7x16xf32>
    %c0_6 = arith.constant 0 : index
    %c0_7 = arith.constant 0 : index
    %c2 = arith.constant 2 : index
    %c0_8 = arith.constant 0 : index
    %3 = tpu.strided_load %arg1[%c0_6, %c0_7, %c2, %c0_8] {strides = array<i32: 1, 1, 2, 1>} : memref<1x4x16x16xf32, #tpu.memory_space<vmem>>, vector<1x4x7x16xf32>
    %4 = arith.maximumf %2, %3 : vector<1x4x7x16xf32>
    %c0_9 = arith.constant 0 : index
    %c0_10 = arith.constant 0 : index
    %c3 = arith.constant 3 : index
    %c0_11 = arith.constant 0 : index
    %5 = tpu.strided_load %arg1[%c0_9, %c0_10, %c3, %c0_11] {strides = array<i32: 1, 1, 2, 1>} : memref<1x4x16x16xf32, #tpu.memory_space<vmem>>, vector<1x4x7x16xf32>
    %6 = arith.maximumf %4, %5 : vector<1x4x7x16xf32>
    %7 = vector.extract_strided_slice %6 {offsets = [0, 0, 0, 0], sizes = [1, 4, 7, 14], strides = [1, 1, 1, 1]} : vector<1x4x7x16xf32> to vector<1x4x7x14xf32>
    %8 = vector.extract_strided_slice %6 {offsets = [0, 0, 0, 1], sizes = [1, 4, 7, 14], strides = [1, 1, 1, 1]} : vector<1x4x7x16xf32> to vector<1x4x7x14xf32>
    %9 = arith.maximumf %7, %8 : vector<1x4x7x14xf32>
    %10 = vector.extract_strided_slice %6 {offsets = [0, 0, 0, 2], sizes = [1, 4, 7, 14], strides = [1, 1, 1, 1]} : vector<1x4x7x16xf32> to vector<1x4x7x14xf32>
    %11 = arith.maximumf %9, %10 : vector<1x4x7x14xf32>
    %12 = vector.extract_strided_slice %11 {offsets = [0, 0, 0, 0], sizes = [1, 3, 7, 14], strides = [1, 1, 1, 1]} : vector<1x4x7x14xf32> to vector<1x3x7x14xf32>
    %13 = vector.extract_strided_slice %11 {offsets = [0, 1, 0, 0], sizes = [1, 3, 7, 14], strides = [1, 1, 1, 1]} : vector<1x4x7x14xf32> to vector<1x3x7x14xf32>
    %14 = arith.maximumf %12, %13 : vector<1x3x7x14xf32>
    %c0_12 = arith.constant 0 : index
    %c0_13 = arith.constant 0 : index
    %c0_14 = arith.constant 0 : index
    %c0_15 = arith.constant 0 : index
    %15 = vector.load %arg2[%c0_12, %c0_13, %c0_14, %c0_15] : memref<1x3x7x14xf32, #tpu.memory_space<vmem>>, vector<1x3x7x14xf32>
    tpu.vector_store %arg2[%c0_12, %c0_13, %c0_14, %c0_15], %14 {strides = array<i32>} : memref<1x3x7x14xf32, #tpu.memory_space<vmem>>, vector<1x3x7x14xf32>,
    return
  }
  func.func @transform_0(%arg0: i32) -> (i32, i32, i32, i32) {
    %c0_i32 = arith.constant 0 : i32
    %c0_i32_0 = arith.constant 0 : i32
    %c0_i32_1 = arith.constant 0 : i32
    %c0_i32_2 = arith.constant 0 : i32
    return %arg0, %c0_i32, %c0_i32_0, %c0_i32_1 : i32, i32, i32, i32
  }
  func.func @transform_1(%arg0: i32) -> (i32, i32, i32, i32) {
    %c0_i32 = arith.constant 0 : i32
    %c0_i32_0 = arith.constant 0 : i32
    %c0_i32_1 = arith.constant 0 : i32
    %c0_i32_2 = arith.constant 0 : i32
    return %arg0, %c0_i32, %c0_i32_0, %c0_i32_1 : i32, i32, i32, i32
  }
}

</mosaic_0001>

<bundles_post_ra>
// kernel: tpu_custom_call.1
= control target key start
LH: loop header
LB: loop body
LE: loop exit
PB: predicated region body
PF: predicated region fallthrough
CT: control target
= control target key end

     0   :  { %6 = vsyncpa [#allocation3], 0  ;;  %s550_s0 = inlined_call_operand.hbm [shape: f32[2,4,16,16], index: 0, kind: input, shape index: {}]   ;;  %s551_s1 = inlined_call_operand.vmem [shape: f32[2,3,7,14], index: 1, kind: output, shape index: {}]  }
   0x1   :  { %8 = vsyncpa [#allocation3 + $0x1], 0  ;;  %s442_s6 = smov 0   ;;  %s444_s7 = smov 0  }
   0x2   :  { %s446_s8 = smov 0   ;;  %s448_s9 = smov 0  }
   0x3 LB: > { %s461_s10 = sadd.s32 4294967295, %s425_s9   ;;  %s464_s11 = sadd.s32 1, %s425_s9   ;;  %s425_s9 = sphi %s448_s9, %s558_s9   ;;  %s421_s8 = sphi %s446_s8, %s557_s8   ;;  %s417_s7 = sphi %s444_s7, %s556_s7   ;;  %s413_s6 = sphi %s442_s6, %s555_s6  }
   0x4   : > { %s18_s12 = ssub.s32 %s425_s9, %s464_s11  ;;  %s21_s13 = sadd.s32 1, %s421_s8 }
   0x5   : > { %p19_p0 = scmp.eq.s32.totalorder %s18_s12, 0  ;;  %p28_p1 = scmp.ne.s32.totalorder %s421_s8, %s417_s7 }
   0x6   : > { %p29_p2 = scmp.eq.s32.totalorder %s425_s9, 0  ;;  %p34_p3 = scmp.ne.s32.totalorder %s417_s7, %s413_s6 }
   0x7   : > { %s474_s14 = scalar_select %p19_p0, %s421_s8, %s21_s13  }
   0x8   : > { %p30_p4 = por %p29_p2, %p28_p1  ;;  %p35_p5 = scmp.eq.s32.totalorder %s461_s10, 0 }
   0x9   : > { %p324_p6 = scmp.lt.s32.totalorder %s425_s9, 2  ;;  %s84_s16 = sand.u32 1, %s421_s8  }
   0xa   : > { %p478_p7 = por %p35_p5, %p34_p3  ;;  %s293_s17 = sshll.u32 %s84_s16, 6 }
   0xb   : > { %s316_s18 = sshll.u32 %s425_s9, 10  ;;  %s88_s22 = scalar_lea.vmem [#allocation2], %s293_s17 }
   0xc   : > { %s487_s21 = scalar_lea.hbm %s550_s0, %s316_s18  ;;  %s95_s23 = sshll.u32 %s88_s22, 4  ;;  %s489_s23 = int_to_ptr.vmem [resolvable:$true] %s95_s23 }
   0xd   : > { %p491_p8 = pnand %p324_p6, %p30_p4  ;;  %s496_s25 = scalar_lea.sflag [#allocation3], %s84_s16 }
   0xe   : > { %s361_s26 = scalar_lea.hbm %s487_s21, 1024  ;;  %s366_s29 = scalar_lea.hbm %s550_s0, 2048 }
   0xf   : > { %p362_p10 = scmp.ne.s32.totalorder %s487_s21, %s361_s26  ;;  %p363_p11 = pneg %p491_p8 }
  0x10   : > { %p367_p0 = scmp.lt.u32.totalorder %s487_s21, %s550_s0  ;;  %p368_p1 = scmp.lt.u32.totalorder %s366_s29, %s361_s26 }
  0x11   : > { %p364_p12 = pnand %p363_p11, %p362_p10  ;;  %p370_p3 = scmp.lt.u32.totalorder %s361_s26, %s487_s21 }
  0x12   : > { %p369_p2 = por %p368_p1, %p367_p0 }
  0x13   : > { %p365_p13 = pneg %p364_p12 }
  0x14   : > { %p371_p4 = por %p370_p3, %p369_p2 }
  0x16   : > { %p372_p5 = pnand %p371_p4, %p365_p13 }
  0x18   : > { %375 = shalt.err (!%p372_p5)
}
  0x19   : > { %s376_s3 = scalar_lea.vmem %s489_s23, 1024  ;;  %s427_s4 = smov [#allocation2]  }
  0x1a   : > { %p377_p6 = scmp.ne.s32.totalorder %s489_s23, %s376_s3  ;;  %s381_s5 = sshll.u32 %s427_s4, 4  ;;  %s382_s5 = int_to_ptr.vmem [resolvable:$false] %s381_s5 }
  0x1b   : > { %s383_s6 = scalar_lea.vmem %s382_s5, 2048  ;;  %p384_p9 = scmp.lt.s32.totalorder %s489_s23, %s382_s5 }
  0x1c   : > { %p379_p10 = pnand %p377_p6, %p363_p11  ;;  %p385_p0 = scmp.lt.s32.totalorder %s383_s6, %s376_s3 }
  0x1e   : > { %p380_p12 = pneg %p379_p10  ;;  %p386_p1 = por %p385_p0, %p384_p9 }
  0x20   : > { %p387_p2 = pnand %p386_p1, %p380_p12 }
  0x22   : > { %390 = shalt.err (!%p387_p2)
}
  0x23   : > { %s428_s12 = smov 128   ;;  %s429_s13 = smov 8  }
  0x24   : > { %323 = dma.hbm_to_vmem [thread:$0]  (!%p491_p8), %s487_s21, 1024, %s489_s23, %s496_s25, %s428_s12, %s428_s12, %s429_s13  }
  0x25   : > { %p103_p11 = scmp.lt.s32.totalorder %s425_s9, 3  ;;  %p554_p13 = scmp.ge.s32.totalorder %s425_s9, 1 }
  0x27   : > { %p104_p3 = pnand %p554_p13, %p103_p11 }
  0x28   : > { %s109_s16 = sand.u32 (!%p104_p3), 1, %s417_s7  }
  0x29   : > { %107 = sbr.rel (%p104_p3) target bundleno = 191 (0xbf), region = 24  ;;  %s297_s17 = sshll.u32 (!%p104_p3), %s109_s16, 6 }
  0x2a   : > { %s110_s18 = scalar_lea.sflag (!%p104_p3), [#allocation3], %s109_s16  ;;  %s113_s19 = scalar_lea.vmem (!%p104_p3), [#allocation2], %s297_s17 }
  0x30   : > { %408 = dma.done.wait (%p478_p7), %s110_s18, 1024  }
  0x31   : > { %410 = vsyncadd (%p478_p7), %s110_s18, 4294966272  ;;  %v300_v0 = vld [vmem:[%s113_s19 + $0x20] ss:$2 sm:$0x7f]  ;;  %s430_s9 = smov 127   ;;  %s431_s15 = smov 126  }
  0x32   : > { %v304_v1 = vld [vmem:[%s113_s19 + $0x21] ss:$2 sm:$0x7f]  ;;  %v308_v3 = vld [vmem:[%s113_s19 + $0x22] ss:$2 sm:$0x7f] }
  0x33   : > { %v154_v2 = vmax.f32 %v300_v0, %v304_v1  ;;  %v312_v4 = vld [vmem:[%s113_s19 + $0x23] ss:$2 sm:$0x7f]  ;;  %v137_v5 = vld [vmem:[%s113_s19] ss:$2 sm:$0x7f] }
  0x34   : > { %v302_v6 = vld [vmem:[%s113_s19 + $0x1] ss:$2 sm:$0x7f]  ;;  %v306_v9 = vld [vmem:[%s113_s19 + $0x2] ss:$2 sm:$0x7f] }
  0x35   : > { %v166_v7 = vmax.f32 %v154_v2, %v308_v3  ;;  %v152_v8 = vmax.f32 %v137_v5, %v302_v6  ;;  %v310_v10 = vld [vmem:[%s113_s19 + $0x3] ss:$2 sm:$0x7f]  ;;  %v301_v11 = vld [vmem:[%s113_s19 + $0x30] ss:$2 sm:$0x7f] }
  0x36   : > { %v305_v12 = vld [vmem:[%s113_s19 + $0x31] ss:$2 sm:$0x7f]  ;;  %v309_v16 = vld [vmem:[%s113_s19 + $0x32] ss:$2 sm:$0x7f] }
  0x37   : > { %v178_v13 = vmax.f32 %v166_v7, %v312_v4  ;;  %v164_v14 = vmax.f32 %v152_v8, %v306_v9  ;;  %v155_v15 = vmax.f32 %v301_v11, %v305_v12  ;;  %v313_v17 = vld [vmem:[%s113_s19 + $0x33] ss:$2 sm:$0x7f]  ;;  %v299_v18 = vld [vmem:[%s113_s19 + $0x10] ss:$2 sm:$0x7f] }
  0x38   : > { %v303_v19 = vld [vmem:[%s113_s19 + $0x11] ss:$2 sm:$0x7f]  ;;  %v307_v23 = vld [vmem:[%s113_s19 + $0x12] ss:$2 sm:$0x7f] }
  0x39   : > { %188 = vrot.lane.b32.xlu1 %v178_v13, %s430_s9  ;;  %v176_v20 = vmax.f32 %v164_v14, %v310_v10  ;;  %v167_v21 = vmax.f32 %v155_v15, %v309_v16  ;;  %v153_v22 = vmax.f32 %v299_v18, %v303_v19  ;;  %v311_v24 = vld [vmem:[%s113_s19 + $0x13] ss:$2 sm:$0x7f]  ;;  %p132_p7 = scmp.lt.s32.totalorder %s461_s10, 1  ;;  %vm219_vm0 = vcmask 112640  }
  0x3b   : > { %184 = vrot.lane.b32.xlu0 %v176_v20, %s430_s9  ;;  %v179_v25 = vmax.f32 %v167_v21, %v313_v17  ;;  %v165_v26 = vmax.f32 %v153_v22, %v307_v23  ;;  %s560_s10 = smov (!%p132_p7, %s461_s10), 1 }
  0x3c   : > { %s317_s20 = smul.u32 24, %s560_s10 }
  0x3d   : > { %190 = vrot.lane.b32.xlu1 %v179_v25, %s430_s9  ;;  %v177_v27 = vmax.f32 %v165_v26, %v311_v24 }
  0x3e   : > { %s136_s23 = scalar_lea.vmem %s551_s1, %s317_s20 }
  0x3f   : > { %186 = vrot.lane.b32.xlu0 %v177_v27, %s430_s9 }
  0x41   : > { %202 = vrot.lane.b32.xlu1 %v177_v27, %s431_s15 }
  0x43   : > { %200 = vrot.lane.b32.xlu0 %v176_v20, %s431_s15 }
  0x45   : > { %206 = vrot.lane.b32.xlu1 %v179_v25, %s431_s15 }
  0x47   : > { %204 = vrot.lane.b32.xlu0 %v178_v13, %s431_s15 }
  0xab   : > { %v189_v28 = vpop.permute.xlu1 %188 }
  0xac   : > { %v198_v40 = vmax.f32 %v178_v13, %v189_v28 }
  0xad   : > { %v185_v29 = vpop.permute.xlu0 %184 }
  0xae   : > { %v196_v34 = vmax.f32 %v176_v20, %v185_v29 }
  0xaf   : > { %v191_v30 = vpop.permute.xlu1 %190 }
  0xb0   : > { %v199_v37 = vmax.f32 %v179_v25, %v191_v30 }
  0xb1   : > { %v187_v31 = vpop.permute.xlu0 %186 }
  0xb2   : > { %v197_v32 = vmax.f32 %v177_v27, %v187_v31 }
  0xb3   : > { %v203_v33 = vpop.permute.xlu1 %202 }
  0xb4   : > { %v213_v35 = vmax.f32 %v197_v32, %v203_v33 }
  0xb5   : > { %v201_v36 = vpop.permute.xlu0 %200 }
  0xb6   : > { %v212_v38 = vmax.f32 %v196_v34, %v201_v36 }
  0xb7   : > { %v207_v39 = vpop.permute.xlu1 %206 }
  0xb8   : > { %v216_v41 = vmax.f32 %v212_v38, %v213_v35  ;;  %v215_v42 = vmax.f32 %v199_v37, %v207_v39 }
  0xb9   : > { %v205_v43 = vpop.permute.xlu0 %204 }
  0xba   : > { %220 = vst.msk [vmem:[%s136_s23] sm:$0x7f] %vm219_vm0, %v216_v41  ;;  %v214_v44 = vmax.f32 %v198_v40, %v205_v43 }
  0xbc   : > { %v217_v45 = vmax.f32 %v213_v35, %v214_v44  ;;  %v218_v46 = vmax.f32 %v214_v44, %v215_v42 }
  0xbe   : > { %221 = vst.msk [vmem:[%s136_s23 + $0x8] sm:$0x7f] %vm219_vm0, %v217_v45  ;;  %222 = vst.msk [vmem:[%s136_s23 + $0x10] sm:$0x7f] %vm219_vm0, %v218_v46 }
  0xbf PF: > { %p11_p8 = scmp.ge.s32.totalorder %s464_s11, 4   ;;  %s555_s6 = smov %s417_s7 }
  0xc0   : > { %s556_s7 = smov %s421_s8  ;;  %s557_s8 = smov %s474_s14 }
  0xc1   : > { %s558_s9 = smov %s464_s11  ;;  %13 = sbr.rel (!%p11_p8) target bundleno = 3 (0x3), region = 79 }
  0xc8   :  { %244 = vsyncpa [#allocation3], 1 }
  0xc9   :  { %246 = vsyncpa [#allocation3 + $0x1], 1 }

</bundles_post_ra>
